<compile_context>
chip_gen: v7x
topology: tpu7x:2x2x1
jax: 0.10.0
libtpu: 0.0.40
codegen_flags: <defaults>
</compile_context>

<pallas_src>
import functools

import jax
import jax.numpy as jnp
from jax import lax
from jax.experimental import pallas as pl
from jax.experimental.pallas import tpu as pltpu

NEG_SLOPE = 0.01  # nn.LeakyReLU default

_TILE_VMEM_BUDGET = 36 * 2**20   # keeps double-buffered tiles well under v7x's 64 MiB
_VMEM_LIMIT_BYTES = 48 * 2**20   # above the 16/32 MiB default scoped limits, < physical


# ------------------------------ fused per-batch kernel ------------------------------
def fused_graph_pool_kernel(x_ref, adj_ref, wcat_ref, bcat_ref,
                            bz_ref, badj_ref, sl_ref,
                            *, n_out_feats, pool, threshold):
    bt, N, F_in = x_ref.shape
    C = wcat_ref.shape[1]
    F = n_out_feats
    K = C - F

    x = x_ref[...]                       # (bt, N, F_in)  bf16
    adj = adj_ref[...]                   # (bt, N, N)     bf16, raw (no self loops)
    wcat = wcat_ref[...]                 # (F_in, C)      bf16  [W_embed | W_assign]
    bcat = bcat_ref[...].reshape(1, 1, C)  # f32           [b_embed | b_assign]

    # ---- fused GCNConv pair, part 1: ONE tall MXU matmul  XW = X @ [We|Wa] ----
    xw = jnp.dot(x.reshape(bt * N, F_in), wcat,
                 preferred_element_type=jnp.float32).reshape(bt, N, C)

    # ---- GCN symmetric normalization, derived in-kernel from adj ----
    # deg[j] = sum_i adj[i, j] + 1 (self loop); a_norm = D^-1/2 (adj^T + I) D^-1/2,
    # applied factored so the (N, N) normalized matrix is never materialized.
    deg = jnp.sum(adj.astype(jnp.float32), axis=1) + 1.0       # (bt, N)  col-sum + loop
    dinv = lax.rsqrt(deg)                                      # (bt, N)
    y = dinv[:, :, None] * xw                                  # scale source features
    # message passing: h_msg[b, n, :] = sum_m adj[b, m, n] * y[b, m, :]
    h_msg = jnp.einsum('bmn,bmc->bnc', adj, y.astype(jnp.bfloat16),
                       preferred_element_type=jnp.float32)
    h = dinv[:, :, None] * (h_msg + y) + bcat                  # (bt, N, C)

    z = h[..., :F]                                             # embed branch (bt, N, F)
    z = jnp.where(z > 0, z, NEG_SLOPE * z)                     # LeakyReLU
    s_logits = h[..., F:]                                      # assign branch (bt, N, K)

    # ---- softmax: dim=1 (nodes) if pool else dim=-1 (assignments) ----
    axis = 1 if pool else 2
    m = jnp.max(s_logits, axis=axis, keepdims=True)
    e = jnp.exp(s_logits - m)
    denom = jnp.sum(e, axis=axis, keepdims=True)
    sm = e * pl.reciprocal(denom, approx=False)                # (bt, N, K) f32

    # ---- fused pooling: one sm^T pass over [z | adj], then a small (K,N)@(N,K) ----
    sm_bf = sm.astype(jnp.bfloat16)
    cat = jnp.concatenate([z.astype(jnp.bfloat16), adj], axis=-1)     # (bt, N, F+N)
    pooled = jnp.einsum('bnk,bnc->bkc', sm_bf, cat,
                        preferred_element_type=jnp.float32)           # (bt, K, F+N)
    bz = pooled[..., :F]                                              # (bt, K, F)
    tmp = pooled[..., F:]                                             # (bt, K, N)
    badj = jnp.einsum('bkm,bmj->bkj', tmp.astype(jnp.bfloat16), sm_bf,
                      preferred_element_type=jnp.float32)             # (bt, K, K)
    badj = jnp.where(badj > threshold, badj, jnp.zeros_like(badj))    # nn.Threshold(t,0)

    # ---- lane-dense flattened stores (reshaped back in the wrapper) ----
    bz_ref[...] = bz.reshape(bt, K * F)
    badj_ref[...] = badj.reshape(bt, K * K)
    sl_ref[...] = sm.reshape(bt, N * K)


# ----------------------------------- wrapper ----------------------------------------
def _pick_batch_tile(b_size, N, F_in, F, K, budget_bytes):
    """Largest divisor of b_size whose double-buffered tile footprint fits the budget."""
    bf, f32 = 2, 4
    per_batch = (
        2 * (N * N + N * F_in) * bf            # adj + x input tiles, double-buffered
        + 2 * (K * F + K * K + N * K) * f32    # output tiles, double-buffered
        + N * (F + K) * (2 * f32 + bf)         # xw / h (f32) + bf16 staging
        + N * (F + N) * bf                     # [z | adj] concat
    )
    candidates = [d for d in range(1, b_size + 1)
                  if b_size % d == 0 and d * per_batch <= budget_bytes]
    if not candidates:
        return 1
    # Prefer tiles that keep the flattened 2-D output blocks sublane-aligned.
    aligned = [d for d in candidates if d == b_size or d % 8 == 0]
    return max(aligned) if aligned else max(candidates)


def graph_pooling_forward(b_z_flat, b_adj, edge_index, edge_weights, params,
                          *, b_size, n_nodes, n_out_nodes, n_out_feats,
                          pool=False, threshold=0.1):
    M, F_in = b_z_flat.shape
    assert M == b_size * n_nodes
    N, K, F = n_nodes, n_out_nodes, n_out_feats

    # NOTE: the GCN normalization is derived in-kernel from b_adj.  This assumes the
    # (unused here) edge_index / edge_weights are block-diagonal over the batch and
    # exactly mirror b_adj's entries.  If they can diverge, rebuild a_norm from the
    # edge list instead of deriving it in-kernel.
    del edge_index, edge_weights

    # ---- concat the two GCNConv weights / biases; stream weights in bf16 ----
    w_e, b_e, w_a, b_a = params
    w_cat = jnp.concatenate([w_e, w_a], axis=1).astype(jnp.bfloat16)       # (F_in, F+K)
    b_cat = jnp.concatenate([b_e, b_a]).reshape(1, F + K).astype(jnp.float32)

    x = b_z_flat.reshape(b_size, N, F_in).astype(jnp.bfloat16)
    adj = b_adj.astype(jnp.bfloat16)

    bt = _pick_batch_tile(b_size, N, F_in, F, K, _TILE_VMEM_BUDGET)
    grid = (b_size // bt,)

    kern = functools.partial(fused_graph_pool_kernel,
                             n_out_feats=F, pool=pool, threshold=threshold)
    bz2d, badj2d, sl2d = pl.pallas_call(
        kern,
        grid=grid,
        in_specs=[
            pl.BlockSpec((bt, N, F_in), lambda b: (b, 0, 0)),    # x        (bf16)
            pl.BlockSpec((bt, N, N), lambda b: (b, 0, 0)),       # raw adj  (bf16)
            # TODO(synk): pipeline_mode=pl.Buffered(1) on the two resident params would
            # free one Wcat-sized VMEM buffer; left at the default for compile safety.
            pl.BlockSpec((F_in, F + K), lambda b: (0, 0)),       # w_cat    (bf16, resident)
            pl.BlockSpec((1, F + K), lambda b: (0, 0)),          # b_cat    (f32,  resident)
        ],
        out_specs=[
            pl.BlockSpec((bt, K * F), lambda b: (b, 0)),
            pl.BlockSpec((bt, K * K), lambda b: (b, 0)),
            pl.BlockSpec((bt, N * K), lambda b: (b, 0)),
        ],
        out_shape=(jax.ShapeDtypeStruct((b_size, K * F), jnp.float32),
                   jax.ShapeDtypeStruct((b_size, K * K), jnp.float32),
                   jax.ShapeDtypeStruct((b_size, N * K), jnp.float32)),
        compiler_params=pltpu.CompilerParams(
            dimension_semantics=("parallel",),
            vmem_limit_bytes=_VMEM_LIMIT_BYTES),
    )(x, adj, w_cat, b_cat)

    b_z_out = bz2d.reshape(b_size, K, F)
    b_adj_out = badj2d.reshape(b_size, K, K)
    s_l = sl2d.reshape(b_size, N, K)

    # gcn branch returns directly (nodenorm only applies to the rgcn branch)
    # TODO(synk): rgcn branch (RGCNConv + BatchNorm1d nodenorm) not implemented.
    # TODO(synk): optional lane-padding of N / F+K to multiples of 128 (needs softmax
    # and pooling masks for the padded nodes/assignments) not implemented.
    return (b_z_out, b_adj_out), s_l


# ---------------------------- pure-JAX reference (check) ----------------------------
def _reference(b_z_flat, b_adj, a_norm_full, params, *, b_size, n_nodes,
               n_out_nodes, n_out_feats, pool, threshold):
    w_e, b_e, w_a, b_a = params
    z = a_norm_full @ (b_z_flat @ w_e) + b_e
    z = jnp.where(z > 0, z, NEG_SLOPE * z)
    s = a_norm_full @ (b_z_flat @ w_a) + b_a
    z = z.reshape(b_size, n_nodes, n_out_feats)
    s = s.reshape(b_size, n_nodes, n_out_nodes)
    s = jax.nn.softmax(s, axis=1 if pool else -1)
    bz = jnp.einsum('bnk,bnf->bkf', s, z)
    badj = jnp.einsum('bnk,bnm,bmj->bkj', s, b_adj, s)
    badj = jnp.where(badj > threshold, badj, 0.0)
    return bz, badj, s


# ------------------------------------ demo ------------------------------------------
if __name__ == "__main__":
    b_size, n_nodes = 2, 8
    n_in_feats, n_out_nodes, n_out_feats = 16, 4, 8
    M = b_size * n_nodes

    key = jax.random.PRNGKey(0)
    k_adj, k_x, k_we, k_wa = jax.random.split(key, 4)

    # dense batched adjacency (no self loops), weights in (0,1)
    w_adj = jax.random.uniform(k_adj, (b_size, n_nodes, n_nodes), jnp.float32)
    b_adj = w_adj * (1.0 - jnp.eye(n_nodes, dtype=jnp.float32))

    # sparse edge list consistent with b_adj (block-diagonal over the batch)
    bb, ii, jj = jnp.meshgrid(jnp.arange(b_size), jnp.arange(n_nodes),
                              jnp.arange(n_nodes), indexing="ij")
    off_diag = (ii != jj).reshape(-1)
    src = (bb * n_nodes + ii).reshape(-1)[off_diag]
    dst = (bb * n_nodes + jj).reshape(-1)[off_diag]
    b_edge_index = jnp.stack([src, dst]).astype(jnp.int32)            # (2, n_edges)
    b_edge_weights = b_adj.reshape(-1)[off_diag].astype(jnp.float32)  # (n_edges,)

    # node features (b_size * n_nodes, n_in_feats)
    b_z = jax.random.normal(k_x, (M, n_in_feats), jnp.float32)

    # GCNConv linear weights + biases
    w_e = (jax.random.normal(k_we, (n_in_feats, n_out_feats), jnp.float32)
           / jnp.sqrt(n_in_feats))
    b_e = jnp.zeros((n_out_feats,), jnp.float32)
    w_a = (jax.random.normal(k_wa, (n_in_feats, n_out_nodes), jnp.float32)
           / jnp.sqrt(n_in_feats))
    b_a = jnp.zeros((n_out_nodes,), jnp.float32)

    (bz, badj), s_l = graph_pooling_forward(
        b_z, b_adj, b_edge_index, b_edge_weights, (w_e, b_e, w_a, b_a),
        b_size=b_size, n_nodes=n_nodes,
        n_out_nodes=n_out_nodes, n_out_feats=n_out_feats,
        pool=False, threshold=0.1)
    jax.block_until_ready((bz, badj, s_l))

    assert bz.shape == (b_size, n_out_nodes, n_out_feats), bz.shape
    assert badj.shape == (b_size, n_out_nodes, n_out_nodes), badj.shape
    assert s_l.shape == (b_size, n_nodes, n_out_nodes), s_l.shape

    # light self-check against a pure-JAX f32 reference (full-M densify, as in PyG).
    row, col = b_edge_index[0], b_edge_index[1]
    loops = jnp.arange(M, dtype=row.dtype)
    row_f = jnp.concatenate([row, loops]); col_f = jnp.concatenate([col, loops])
    w_f = jnp.concatenate([b_edge_weights, jnp.ones((M,), jnp.float32)])
    deg = jnp.zeros((M,), jnp.float32).at[col_f].add(w_f)
    dinv = jnp.where(deg > 0, 1.0 / jnp.sqrt(deg), 0.0)
    a_full = jnp.zeros((M, M), jnp.float32).at[col_f, row_f].add(
        dinv[row_f] * w_f * dinv[col_f])
    bz_r, badj_r, s_r = _reference(
        b_z, b_adj, a_full, (w_e, b_e, w_a, b_a),
        b_size=b_size, n_nodes=n_nodes, n_out_nodes=n_out_nodes,
        n_out_feats=n_out_feats, pool=False, threshold=0.1)
    # bf16 streaming (f32 accumulation) in the kernel -> bf16-level tolerance.
    # badj is excluded: values near the 0.1 threshold may flip the sparsity mask.
    err = max(float(jnp.max(jnp.abs(bz - bz_r))),
              float(jnp.max(jnp.abs(s_l - s_r))))
    assert err < 1.5e-1, f"numerical mismatch vs reference: {err}"

    print("KERNEL_OK")
</pallas_src>

<mosaic_0001>
module attributes {stable_mosaic.version = 11 : i64} {
  func.func @fused_graph_pool_kernel(%arg0: i32, %arg1: memref<2x8x16xbf16, #tpu.memory_space<vmem>>, %arg2: memref<2x8x8xbf16, #tpu.memory_space<vmem>>, %arg3: memref<16x12xbf16, #tpu.memory_space<vmem>>, %arg4: memref<1x12xf32, #tpu.memory_space<vmem>>, %arg5: memref<2x32xf32, #tpu.memory_space<vmem>>, %arg6: memref<2x16xf32, #tpu.memory_space<vmem>>, %arg7: memref<2x32xf32, #tpu.memory_space<vmem>>) attributes {dimension_semantics = [#tpu.dimension_semantics<parallel>], iteration_bounds = array<i64: 1>, scalar_prefetch = 0 : i64, scratch_operands = 0 : i64, tpu.core_type = #tpu.core_type<tc>, window_params = [{transform_indices = @transform_0, window_bounds = array<i64: 2, 8, 16>}, {transform_indices = @transform_1, window_bounds = array<i64: 2, 8, 8>}, {pipeline_mode = #tpu.pipeline_mode<synchronous>, transform_indices = @transform_2, window_bounds = array<i64: 16, 12>}, {pipeline_mode = #tpu.pipeline_mode<synchronous>, transform_indices = @transform_3, window_bounds = array<i64: 1, 12>}, {transform_indices = @transform_4, window_bounds = array<i64: 2, 32>}, {transform_indices = @transform_5, window_bounds = array<i64: 2, 16>}, {transform_indices = @transform_6, window_bounds = array<i64: 2, 32>}]} {
    %c0 = arith.constant 0 : index
    %c0_0 = arith.constant 0 : index
    %c0_1 = arith.constant 0 : index
    %0 = vector.load %arg1[%c0, %c0_0, %c0_1] : memref<2x8x16xbf16, #tpu.memory_space<vmem>>, vector<2x8x16xbf16>
    %c0_2 = arith.constant 0 : index
    %c0_3 = arith.constant 0 : index
    %c0_4 = arith.constant 0 : index
    %1 = vector.load %arg2[%c0_2, %c0_3, %c0_4] : memref<2x8x8xbf16, #tpu.memory_space<vmem>>, vector<2x8x8xbf16>
    %c0_5 = arith.constant 0 : index
    %c0_6 = arith.constant 0 : index
    %2 = vector.load %arg3[%c0_5, %c0_6] : memref<16x12xbf16, #tpu.memory_space<vmem>>, vector<16x12xbf16>
    %c0_7 = arith.constant 0 : index
    %c0_8 = arith.constant 0 : index
    %3 = vector.load %arg4[%c0_7, %c0_8] : memref<1x12xf32, #tpu.memory_space<vmem>>, vector<1x12xf32>
    %4 = vector.shape_cast %3 : vector<1x12xf32> to vector<1x1x12xf32>
    %5 = vector.shape_cast %0 : vector<2x8x16xbf16> to vector<16x16xbf16>
    %cst = arith.constant dense<0.000000e+00> : vector<16x12xf32>
    %6 = tpu.matmul %5, %2, %cst {dimension_numbers = #tpu.dot_dimension_numbers<[1], [0], [0], [1], [0, 0, 1, 1], [], []>} : vector<16x16xbf16>, vector<16x12xbf16>, vector<16x12xf32> -> vector<16x12xf32>
    %7 = vector.shape_cast %6 : vector<16x12xf32> to vector<2x8x12xf32>
    %8 = arith.extf %1 : vector<2x8x8xbf16> to vector<2x8x8xf32>
    %cst_9 = arith.constant dense<0.000000e+00> : vector<2x8xf32>
    %9 = vector.multi_reduction <add>, %8, %cst_9 [1] : vector<2x8x8xf32> to vector<2x8xf32>
    %cst_10 = arith.constant 1.000000e+00 : f32
    %10 = vector.broadcast %cst_10 : f32 to vector<2x8xf32>
    %11 = arith.addf %9, %10 : vector<2x8xf32>
    %12 = math.rsqrt %11 : vector<2x8xf32>
    %13 = vector.shape_cast %12 : vector<2x8xf32> to vector<2x8x1xf32>
    %14 = vector.broadcast %13 : vector<2x8x1xf32> to vector<2x8x12xf32>
    %15 = arith.mulf %14, %7 : vector<2x8x12xf32>
    %16 = arith.truncf %15 : vector<2x8x12xf32> to vector<2x8x12xbf16>
    "tpu.trace_start"() <{level = 10 : i32, message = "bmn,bmc->bnc"}> : () -> ()
    %cst_11 = arith.constant dense<0.000000e+00> : vector<2x8x12xf32>
    %17 = tpu.matmul %1, %16, %cst_11 {dimension_numbers = #tpu.dot_dimension_numbers<[1], [1], [2], [2], [0, 0, 0, 2, 1, 2], [0], [0]>} : vector<2x8x8xbf16>, vector<2x8x12xbf16>, vector<2x8x12xf32> -> vector<2x8x12xf32>
    "tpu.trace_stop"() : () -> ()
    %18 = vector.shape_cast %12 : vector<2x8xf32> to vector<2x8x1xf32>
    %19 = arith.addf %17, %15 : vector<2x8x12xf32>
    %20 = vector.broadcast %18 : vector<2x8x1xf32> to vector<2x8x12xf32>
    %21 = arith.mulf %20, %19 : vector<2x8x12xf32>
    %22 = vector.broadcast %4 : vector<1x1x12xf32> to vector<2x8x12xf32>
    %23 = arith.addf %21, %22 : vector<2x8x12xf32>
    %24 = vector.extract_strided_slice %23 {offsets = [0, 0, 0], sizes = [2, 8, 8], strides = [1, 1, 1]} : vector<2x8x12xf32> to vector<2x8x8xf32>
    %cst_12 = arith.constant 0.000000e+00 : f32
    %25 = vector.broadcast %cst_12 : f32 to vector<2x8x8xf32>
    %26 = arith.cmpf ogt, %24, %25 : vector<2x8x8xf32>
    %cst_13 = arith.constant 0.00999999977 : f32
    %27 = vector.broadcast %cst_13 : f32 to vector<2x8x8xf32>
    %28 = arith.mulf %27, %24 : vector<2x8x8xf32>
    %29 = arith.select %26, %24, %28 : vector<2x8x8xi1>, vector<2x8x8xf32>
    %30 = vector.extract_strided_slice %23 {offsets = [0, 0, 8], sizes = [2, 8, 4], strides = [1, 1, 1]} : vector<2x8x12xf32> to vector<2x8x4xf32>
    %cst_14 = arith.constant dense<0xFF800000> : vector<2x8xf32>
    %31 = vector.multi_reduction <maximumf>, %30, %cst_14 [2] : vector<2x8x4xf32> to vector<2x8xf32>
    %32 = vector.shape_cast %31 : vector<2x8xf32> to vector<2x8x1xf32>
    %33 = vector.broadcast %32 : vector<2x8x1xf32> to vector<2x8x4xf32>
    %34 = arith.subf %30, %33 : vector<2x8x4xf32>
    %35 = math.exp %34 : vector<2x8x4xf32>
    %cst_15 = arith.constant dense<0.000000e+00> : vector<2x8xf32>
    %36 = vector.multi_reduction <add>, %35, %cst_15 [2] : vector<2x8x4xf32> to vector<2x8xf32>
    %37 = vector.shape_cast %36 : vector<2x8xf32> to vector<2x8x1xf32>
    %38 = tpu.reciprocal %37 : vector<2x8x1xf32> -> vector<2x8x1xf32>
    %39 = vector.broadcast %38 : vector<2x8x1xf32> to vector<2x8x4xf32>
    %40 = arith.mulf %35, %39 : vector<2x8x4xf32>
    %41 = arith.truncf %40 : vector<2x8x4xf32> to vector<2x8x4xbf16>
    %42 = arith.truncf %29 : vector<2x8x8xf32> to vector<2x8x8xbf16>
    %43 = tpu.concatenate %42, %1 in 2 : vector<2x8x8xbf16>, vector<2x8x8xbf16> -> vector<2x8x16xbf16>
    "tpu.trace_start"() <{level = 10 : i32, message = "bnk,bnc->bkc"}> : () -> ()
    %cst_16 = arith.constant dense<0.000000e+00> : vector<2x4x16xf32>
    %44 = tpu.matmul %41, %43, %cst_16 {dimension_numbers = #tpu.dot_dimension_numbers<[1], [1], [2], [2], [0, 0, 0, 2, 1, 2], [0], [0]>} : vector<2x8x4xbf16>, vector<2x8x16xbf16>, vector<2x4x16xf32> -> vector<2x4x16xf32>
    "tpu.trace_stop"() : () -> ()
    %45 = vector.extract_strided_slice %44 {offsets = [0, 0, 0], sizes = [2, 4, 8], strides = [1, 1, 1]} : vector<2x4x16xf32> to vector<2x4x8xf32>
    %46 = vector.extract_strided_slice %44 {offsets = [0, 0, 8], sizes = [2, 4, 8], strides = [1, 1, 1]} : vector<2x4x16xf32> to vector<2x4x8xf32>
    %47 = arith.truncf %46 : vector<2x4x8xf32> to vector<2x4x8xbf16>
    "tpu.trace_start"() <{level = 10 : i32, message = "bkm,bmj->bkj"}> : () -> ()
    %cst_17 = arith.constant dense<0.000000e+00> : vector<2x4x4xf32>
    %48 = tpu.matmul %47, %41, %cst_17 {dimension_numbers = #tpu.dot_dimension_numbers<[2], [1], [1], [2], [0, 0, 0, 1, 1, 2], [0], [0]>} : vector<2x4x8xbf16>, vector<2x8x4xbf16>, vector<2x4x4xf32> -> vector<2x4x4xf32>
    %cst_18 = arith.constant 1.000000e-01 : f32
    "tpu.trace_stop"() : () -> ()
    %49 = vector.broadcast %cst_18 : f32 to vector<2x4x4xf32>
    %50 = arith.cmpf ogt, %48, %49 : vector<2x4x4xf32>
    %cst_19 = arith.constant 0.000000e+00 : f32
    %51 = vector.broadcast %cst_19 : f32 to vector<2x4x4xf32>
    %52 = arith.select %50, %48, %51 : vector<2x4x4xi1>, vector<2x4x4xf32>
    %53 = vector.shape_cast %45 : vector<2x4x8xf32> to vector<2x32xf32>
    %c0_20 = arith.constant 0 : index
    %c0_21 = arith.constant 0 : index
    %54 = vector.load %arg5[%c0_20, %c0_21] : memref<2x32xf32, #tpu.memory_space<vmem>>, vector<2x32xf32>
    tpu.vector_store %arg5[%c0_20, %c0_21], %53 {strides = array<i32>} : memref<2x32xf32, #tpu.memory_space<vmem>>, vector<2x32xf32>,
    %55 = vector.shape_cast %52 : vector<2x4x4xf32> to vector<2x16xf32>
    %c0_22 = arith.constant 0 : index
    %c0_23 = arith.constant 0 : index
    %56 = vector.load %arg6[%c0_22, %c0_23] : memref<2x16xf32, #tpu.memory_space<vmem>>, vector<2x16xf32>
    tpu.vector_store %arg6[%c0_22, %c0_23], %55 {strides = array<i32>} : memref<2x16xf32, #tpu.memory_space<vmem>>, vector<2x16xf32>,
    %57 = vector.shape_cast %40 : vector<2x8x4xf32> to vector<2x32xf32>
    %c0_24 = arith.constant 0 : index
    %c0_25 = arith.constant 0 : index
    %58 = vector.load %arg7[%c0_24, %c0_25] : memref<2x32xf32, #tpu.memory_space<vmem>>, vector<2x32xf32>
    tpu.vector_store %arg7[%c0_24, %c0_25], %57 {strides = array<i32>} : memref<2x32xf32, #tpu.memory_space<vmem>>, vector<2x32xf32>,
    return
  }
  func.func @transform_0(%arg0: i32) -> (i32, i32, i32) {
    %c0_i32 = arith.constant 0 : i32
    %c0_i32_0 = arith.constant 0 : i32
    %c0_i32_1 = arith.constant 0 : i32
    return %arg0, %c0_i32, %c0_i32_0 : i32, i32, i32
  }
  func.func @transform_1(%arg0: i32) -> (i32, i32, i32) {
    %c0_i32 = arith.constant 0 : i32
    %c0_i32_0 = arith.constant 0 : i32
    %c0_i32_1 = arith.constant 0 : i32
    return %arg0, %c0_i32, %c0_i32_0 : i32, i32, i32
  }
  func.func @transform_2(%arg0: i32) -> (i32, i32) {
    %c0_i32 = arith.constant 0 : i32
    %c0_i32_0 = arith.constant 0 : i32
    %c0_i32_1 = arith.constant 0 : i32
    return %c0_i32, %c0_i32_0 : i32, i32
  }
  func.func @transform_3(%arg0: i32) -> (i32, i32) {
    %c0_i32 = arith.constant 0 : i32
    %c0_i32_0 = arith.constant 0 : i32
    %c0_i32_1 = arith.constant 0 : i32
    return %c0_i32, %c0_i32_0 : i32, i32
  }
  func.func @transform_4(%arg0: i32) -> (i32, i32) {
    %c0_i32 = arith.constant 0 : i32
    %c0_i32_0 = arith.constant 0 : i32
    return %arg0, %c0_i32 : i32, i32
  }
  func.func @transform_5(%arg0: i32) -> (i32, i32) {
    %c0_i32 = arith.constant 0 : i32
    %c0_i32_0 = arith.constant 0 : i32
    return %arg0, %c0_i32 : i32, i32
  }
  func.func @transform_6(%arg0: i32) -> (i32, i32) {
    %c0_i32 = arith.constant 0 : i32
    %c0_i32_0 = arith.constant 0 : i32
    return %arg0, %c0_i32 : i32, i32
  }
}

</mosaic_0001>

<bundles_post_ra>
// kernel: tpu_custom_call.1
= control target key start
LH: loop header
LB: loop body
LE: loop exit
PB: predicated region body
PF: predicated region fallthrough
CT: control target
= control target key end

     0   :  { %12 = vsyncpa [#allocation3], 0  ;;  %s1356_s0 = inlined_call_operand.hbm [shape: bf16[2,8,16], index: 0, kind: input, shape index: {}]   ;;  %s1357_s1 = inlined_call_operand.hbm [shape: bf16[2,8,8], index: 1, kind: input, shape index: {}]   ;;  %s1358_s2 = inlined_call_operand.hbm [shape: bf16[16,12], index: 2, kind: input, shape index: {}]   ;;  %s1359_s3 = inlined_call_operand.vmem [shape: f32[1,12], index: 3, kind: input, shape index: {}]   ;;  %s1360_s4 = inlined_call_operand.hbm [shape: f32[2,32], index: 4, kind: output, shape index: {0}]   ;;  %s1361_s5 = inlined_call_operand.hbm [shape: f32[2,16], index: 5, kind: output, shape index: {1}]   ;;  %s1362_s6 = inlined_call_operand.hbm [shape: f32[2,32], index: 6, kind: output, shape index: {2}]  }
   0x1   :  { %13 = vsyncpa [#allocation6], 0 }
   0x2   :  { %14 = vsyncpa [#allocation4], 0 }
   0x3   :  { %15 = vsyncpa [#allocation10], 0  ;;  %s1084_s21 = smov [#allocation5]   ;;  %s1085_s23 = smov [#allocation2]  }
   0x4   :  { %s33_s22 = sshll.u32 %s1084_s21, 4  ;;  %s21_s24 = sshll.u32 %s1085_s23, 4  ;;  %s34_s22 = int_to_ptr.vmem [resolvable:$true] %s33_s22  ;;  %s1138_s24 = int_to_ptr.vmem [resolvable:$true] %s21_s24 }
   0x5   :  { %s944_s27 = scalar_lea.hbm %s1357_s1, 128 }
   0x6   :  { %p945_p0 = scmp.ne.s32.totalorder %s1357_s1, %s944_s27  ;;  %p948_p1 = scmp.lt.u32.totalorder %s944_s27, %s1357_s1 }
   0x8   :  { %p950_p2 = pnand %p948_p1, %p945_p0 }
   0xa   :  { %953 = shalt.err (!%p950_p2)
}
   0xb   :  { %s954_s8 = scalar_lea.vmem %s34_s22, 128  ;;  %p959_p4 = scmp.lt.s32.totalorder %s34_s22, %s34_s22 }
   0xc   :  { %p955_p3 = scmp.ne.s32.totalorder %s34_s22, %s954_s8  ;;  %p960_p5 = scmp.lt.s32.totalorder %s954_s8, %s954_s8 }
   0xe   :  { %p961_p6 = por %p960_p5, %p959_p4 }
  0x10   :  { %p962_p7 = pnand %p961_p6, %p955_p3 }
  0x12   :  { %965 = shalt.err (!%p962_p7)
}
  0x13   :  { %s1086_s9 = smov 64   ;;  %s1087_s10 = smov 4  }
  0x14   :  { %39 = dma.hbm_to_vmem [thread:$0]  %s1357_s1, 128, %s34_s22, [#allocation6], %s1086_s9, %s1086_s9, %s1087_s10  }
  0x15   :  { %s966_s15 = scalar_lea.hbm %s1356_s0, 128 }
  0x16   :  { %p967_p8 = scmp.ne.s32.totalorder %s1356_s0, %s966_s15  ;;  %p970_p9 = scmp.lt.u32.totalorder %s966_s15, %s1356_s0 }
  0x18   :  { %p972_p10 = pnand %p970_p9, %p967_p8 }
  0x1a   :  { %975 = shalt.err (!%p972_p10)
}
  0x1b   :  { %s976_s20 = scalar_lea.vmem %s1138_s24, 128  ;;  %p981_p12 = scmp.lt.s32.totalorder %s1138_s24, %s1138_s24 }
  0x1c   :  { %p977_p11 = scmp.ne.s32.totalorder %s1138_s24, %s976_s20  ;;  %p982_p13 = scmp.lt.s32.totalorder %s976_s20, %s976_s20 }
  0x1e   :  { %p983_p0 = por %p982_p13, %p981_p12 }
  0x20   :  { %p984_p1 = pnand %p983_p0, %p977_p11 }
  0x22   :  { %987 = shalt.err (!%p984_p1)
}
  0x23   :  { %27 = dma.hbm_to_vmem [thread:$0]  %s1356_s0, 128, %s1138_s24, [#allocation3], %s1086_s9, %s1086_s9, %s1087_s10  }
  0x24   :  { %s1088_s22 = smov [#allocation7]   ;;  %s988_s27 = scalar_lea.hbm %s1358_s2, 128 }
  0x25   :  { %s45_s23 = sshll.u32 %s1088_s22, 4  ;;  %p989_p2 = scmp.ne.s32.totalorder %s1358_s2, %s988_s27  ;;  %s46_s23 = int_to_ptr.vmem [resolvable:$true] %s45_s23 }
  0x26   :  { %p992_p3 = scmp.lt.u32.totalorder %s988_s27, %s1358_s2 }
  0x28   :  { %p994_p4 = pnand %p992_p3, %p989_p2 }
  0x2a   :  { %997 = shalt.err (!%p994_p4)
}
  0x2b   :  { %s998_s8 = scalar_lea.vmem %s46_s23, 128  ;;  %p1003_p6 = scmp.lt.s32.totalorder %s46_s23, %s46_s23 }
  0x2c   :  { %p999_p5 = scmp.ne.s32.totalorder %s46_s23, %s998_s8  ;;  %p1004_p7 = scmp.lt.s32.totalorder %s998_s8, %s998_s8 }
  0x2e   :  { %p1005_p8 = por %p1004_p7, %p1003_p6 }
  0x30   :  { %p1006_p9 = pnand %p1005_p8, %p999_p5 }
  0x32   :  { %1009 = shalt.err (!%p1006_p9)
}
  0x33   :  { %51 = dma.hbm_to_vmem [thread:$0]  %s1358_s2, 128, %s46_s23, [#allocation6], %s1086_s9, %s1086_s9, %s1087_s10  }
  0x34   :  { %1076 = dma.done.wait [#allocation3], 128  }
  0x35   :  { %1077 = vsyncadd [#allocation3], 4294967168 }
  0x36   :  { %1078 = dma.done.wait [#allocation6], 256  }
  0x37   :  { %1079 = vsyncadd [#allocation6], 4294967040  ;;  %v1089_v0 = vmov 0.0   ;;  %vm1090_vm0 = vmmov 0   ;;  %v928_v1 = vld [vmem:[#allocation7] sm:$0xff]   ;;  %v929_v2 = vld [vmem:[#allocation2] sm:$0xff]  }
  0x38   :  { %866 = vmatprep.subr.bf16.mxu0 %v1089_v0  ;;  %868 = vmatprep.mubr.msk.bf16.mxu0 %vm1090_vm0, %v1089_v0  ;;  %vm82_vm1 = vcmask 130048   ;;  %v1196_v3 = vld [vmem:[#allocation5] sm:$0xf]  ;;  %vm129_vm2 = vcmask 64512   ;;  %v1198_v4 = vld [vmem:[#allocation5 + $0x4] sm:$0xf] }
  0x39   :  { %872 = vmatprep.subr.bf16.mxu1 %v1089_v0  ;;  %874 = vmatprep.mubr.msk.bf16.mxu1 %vm1090_vm0, %v1089_v0  ;;  %v127_v5 = vunpack.c.l.bf16 %v1196_v3  ;;  %v128_v6 = vunpack.c.l.bf16 %v1198_v4  ;;  %vm177_vm3 = vcmask 1043456   ;;  %v845_v42 = vld [vmem:[%s1359_s3] ss:$0 sm:$0xff]  ;;  %vm299_vm4 = vcmask 97344   ;;  %s1091_s3 = smov 120   ;;  %s1092_s11 = smov 8  }
  0x3a   :  { %867 = vmatpush3.bf16.msra.mxu0 %v928_v1  ;;  %158 = vxpose.xlu1.c.b16.start.end [1/1] (short) (narrow) %v1196_v3, 16  ;;  %vm320_vm5 = vcmask 31744   ;;  %s1095_s12 = smov 20   ;;  %s1096_s13 = smov 12   ;;  %vm681_vm10 = vcmask 97280   ;;  %vm791_vm11 = vcmask 162816  }
  0x3b   :  { %878 = vmatprep.subr.bf16.mxu0 %v1089_v0  ;;  %v130_v7 = vsel %vm129_vm2, %v127_v5, 0.0  ;;  %v137_v8 = vsel %vm129_vm2, %v128_v6, 0.0  ;;  %s1097_s14 = smov 16   ;;  %s1098_s15 = smov 24   ;;  %vm629_vm12 = vcmask 195584   ;;  %vm794_vm13 = vcmask 228352  }
  0x3c   :  { %v131_v9 = vrot.slane %v130_v7, 4  ;;  %v138_v10 = vrot.slane %v137_v8, 4  ;;  %s1099_s16 = smov 28   ;;  %vm631_vm14 = vcmask 254976   ;;  %s1101_s18 = smov [#allocation11]   ;;  %vm683_vm15 = vcmask 123904  }
  0x3d   :  { %869 = vmatmul.mubr.msk.bf16.vlgmr.msra.gmra.mrb[0].mxu0 %vm82_vm1, %v929_v2  ;;  %s823_s19 = sshll.u32 %s1101_s18, 4  ;;  %s1102_s20 = smov [#allocation8]   ;;  %s1301_s19 = int_to_ptr.vmem [resolvable:$true] %s823_s19 }
  0x3e   :  { %880 = vmatprep.mubr.msk.bf16.mxu0 %vm1090_vm0, %v1089_v0  ;;  %221 = vxpose.xlu1.c.b16.start.end [1/1] (short) (narrow) %v1198_v4, 16  ;;  %v132_v11 = vadd.f32 %v131_v9, %v130_v7  ;;  %v139_v12 = vadd.f32 %v138_v10, %v137_v8  ;;  %s803_s1 = sshll.u32 %s1102_s20, 4  ;;  %s1303_s1 = int_to_ptr.vmem [resolvable:$true] %s803_s1 }
  0x40   :  { %v133_v13 = vrot.slane %v132_v11, 2  ;;  %v140_v14 = vrot.slane %v139_v12, 2 }
  0x42   :  { %v134_v15 = vadd.f32 %v133_v13, %v132_v11  ;;  %v141_v16 = vadd.f32 %v140_v14, %v139_v12 }
  0x44   :  { %v135_v17 = vrot.slane %v134_v15, 1  ;;  %v142_v18 = vrot.slane %v141_v16, 1 }
  0x46   :  { %v136_v19 = vadd.f32 %v135_v17, %v134_v15  ;;  %v143_v20 = vadd.f32 %v142_v18, %v141_v16  ;;  %v846_v15 = vcombine.low %v1196_v3, %v1196_v3  ;;  %v847_v16 = vcombine.low %v1198_v4, %v1198_v4 }
  0x48   :  { %v144_v21 = vadd.f32 1.0, %v136_v19  ;;  %v145_v22 = vadd.f32 1.0, %v143_v20 }
  0x4a   :  { %932 = vrsqrt.f32 %v144_v21 }
  0x4b   :  { %934 = vrsqrt.f32 %v145_v22 }
  0x54   :  { %v933_v23 = vpop.eup %932 }
  0x55   :  { %149 = vbcast.lane.b32.xlu0 %v933_v23, 256  ;;  %v935_v24 = vpop.eup %934 }
  0x59   :  { %152 = vbcast.lane.b32.xlu0 %v935_v24, 256 }
  0xa0   :  { %v166_v31 = vpop.trf.xlu1 }
  0xa4   :  { %v229_v38 = vpop.trf.xlu1 }
  0xc7   :  { %v150_v25 = vpop.permute.xlu0 %149 }
  0xcb   :  { %v153_v27 = vpop.permute.xlu0 %152 }
 0x110   :  { %v120_v26 = vpop.f32.mrb[0].mxu0 }
 0x111   :  { %v154_v28 = vmul.f32 %v150_v25, %v120_v26  ;;  %v870_v29 = vpop.f32.mrb[1].mxu0 }
 0x112   :  { %v123_v30 = vpop.f32.mrb[2].mxu0 }
 0x113   :  { %v155_v32 = vmul.f32 %v153_v27, %v123_v30  ;;  %v871_v33 = vpop.f32.mrb[3].mxu0  ;;  %v156_v34 = vpack.c.bf16 %v154_v28, %v154_v28 }
 0x114   :  { %v1093_v33 = vmov 1983009808  }
 0x115   :  { %v157_v35 = vpack.c.bf16 %v155_v32, %v155_v32  ;;  %v179_v36 = vsel %vm177_vm3, %v156_v34, 0  ;;  %v584_v34 = vunpack.c.l.s4 %v1093_v33 }
 0x116   :  { %873 = vmatpush3.bf16.msra.mxu1 %v179_v36 }
 0x117   :  { %v241_v37 = vsel %vm177_vm3, %v157_v35, 0  ;;  %884 = vmatprep.subr.bf16.mxu1 %v1089_v0  ;;  %v586_v35 = vlaneseq  ;;  %v585_v36 = vunpack.c.0.s8 %v584_v34 }
 0x118   :  { %879 = vmatpush3.bf16.msra.mxu0 %v241_v37 }
 0x119   :  { %875 = vmatmul.mubr.msk.bf16.vlgmr.msra.gmra.mrb[0].mxu1 %vm129_vm2, %v166_v31  ;;  %890 = vmatprep.subr.bf16.mxu0 %v1089_v0  ;;  %v587_v37 = vshrl.u32 %v586_v35, 7 }
 0x11a   :  { %886 = vmatprep.mubr.msk.bf16.mxu1 %vm1090_vm0, %v1089_v0 }
 0x11b   :  { %881 = vmatmul.mubr.msk.bf16.vlgmr.msra.gmra.mrb[4].mxu0 %vm129_vm2, %v229_v38 }
 0x11c   :  { %892 = vmatprep.mubr.msk.bf16.mxu0 %vm1090_vm0, %v1089_v0 }
 0x1ec   :  { %v215_v39 = vpop.f32.mrb[0].mxu1 }
 0x1ed   :  { %v216_v40 = vadd.f32 %v215_v39, %v154_v28  ;;  %v876_v41 = vpop.f32.mrb[1].mxu1 }
 0x1ee   :  { %v218_v43 = vpop.f32.mrb[2].mxu1  ;;  %v277_v44 = vpop.f32.mrb[4].mxu0 }
 0x1ef   :  { %v283_v45 = vmul.f32 %v216_v40, %v150_v25  ;;  %v278_v46 = vadd.f32 %v277_v44, %v155_v32  ;;  %v877_v47 = vpop.f32.mrb[3].mxu1  ;;  %v882_v48 = vpop.f32.mrb[5].mxu0 }
 0x1f0   :  { %v280_v49 = vpop.f32.mrb[6].mxu0 }
 0x1f1   :  { %v291_v50 = vadd.f32 %v845_v42, %v283_v45  ;;  %v284_v51 = vmul.f32 %v278_v46, %v153_v27  ;;  %v883_v52 = vpop.f32.mrb[7].mxu0 }
 0x1f3   :  { %v292_v53 = vadd.f32 %v845_v42, %v284_v51  ;;  %v300_v54 = vsel %vm299_vm4, %v291_v50, -inf  ;;  %v295_v18 = vmul.f32 0.01, %v291_v50  ;;  %vm293_vm6 = vcmp.gt.f32.partialorder %v291_v50, 0.0 }
 0x1f4   :  { %301 = vmax.xlane.f32.xlu0 %v300_v54  ;;  %v1254_v42 = vsub.s32 %v585_v36, %v587_v37 }
 0x1f5   :  { %v303_v55 = vsel %vm299_vm4, %v292_v53, -inf  ;;  %v297_v20 = vsel %vm293_vm6, %v291_v50, %v295_v18  ;;  %v296_v21 = vmul.f32 0.01, %v292_v53  ;;  %vm294_vm7 = vcmp.gt.f32.partialorder %v292_v53, 0.0 }
 0x1f6   :  { %304 = vmax.xlane.f32.xlu1 %v303_v55  ;;  %v333_v22 = vpack.c.bf16 %v297_v20, %v297_v20  ;;  %v1094_v55 = vmov 1934713408  }
 0x1f7   :  { %v298_v3 = vsel %vm294_vm7, %v292_v53, %v296_v21 }
 0x1f8   :  { %v334_v25 = vpack.c.bf16 %v298_v3, %v298_v3 }
 0x281   :  { %v302_v56 = vpop.xlane.xlu0 %301 }
 0x282   :  { %v306_v57 = vsub.f32 %v291_v50, %v302_v56  ;;  %v600_v56 = vunpack.c.l.s4 %v1094_v55 }
 0x283   :  { %v305_v58 = vpop.xlane.xlu1 %304 }
 0x284   :  { %v308_v59 = vmul.f32 1.442695, %v306_v57  ;;  %v307_v60 = vsub.f32 %v292_v53, %v305_v58 }
 0x286   :  { %936 = vpow2.f32 %v308_v59  ;;  %v310_v61 = vmul.f32 1.442695, %v307_v60  ;;  %v601_v59 = vunpack.c.0.s8 %v600_v56 }
 0x288   :  { %938 = vpow2.f32 %v310_v61 }
 0x290   :  { %v937_v62 = vpop.eup %936 }
 0x291   :  { %314 = vrot.lane.b32.xlu1 %v937_v62, %s1091_s3 }
 0x292   :  { %v939_v63 = vpop.eup %938 }
 0x295   :  { %316 = vrot.lane.b32.xlu1 %v939_v63, %s1091_s3 }
 0x303   :  { %v315_v1 = vpop.permute.xlu1 %314 }
 0x304   :  { %v321_v2 = vsel %vm320_vm5, %v315_v1, 0.0 }
 0x305   :  { %322 = vadd.xlane.f32.xlu0 %v321_v2  ;;  %v604_v2 = vsub.s32 %v601_v59, %v587_v37 }
 0x307   :  { %v317_v5 = vpop.permute.xlu1 %316 }
 0x308   :  { %v324_v6 = vsel %vm320_vm5, %v317_v5, 0.0 }
 0x309   :  { %325 = vadd.xlane.f32.xlu1 %v324_v6 }
 0x392   :  { %v323_v7 = vpop.xlane.xlu0 %322 }
 0x393   :  { %940 = vrcp.f32 %v323_v7 }
 0x396   :  { %v326_v8 = vpop.xlane.xlu1 %325 }
 0x397   :  { %942 = vrcp.f32 %v326_v8 }
 0x39d   :  { %v941_v9 = vpop.eup %940 }
 0x39e   :  { %v1227_v10 = vmul.f32 %v941_v9, %v937_v62 }
 0x3a0   :  { %v331_v11 = vpack.c.bf16 %v1227_v10, %v1227_v10 }
 0x3a1   :  { %v943_v12 = vpop.eup %942 }
 0x3a2   :  { %352 = vrot.lane.b32.xlu0 %v331_v11, %s1091_s3  ;;  %v330_v13 = vmul.f32 %v943_v12, %v939_v63 }
 0x3a4   :  { %v332_v14 = vpack.c.bf16 %v330_v13, %v330_v13 }
 0x3a6   :  { %417 = vrot.lane.b32.xlu0 %v332_v14, %s1091_s3 }
 0x3aa   :  { %341 = vrot.lane.b32.xlu0 %v846_v15, %s1092_s11 }
 0x3ae   :  { %343 = vrot.lane.b32.xlu0 %v847_v16, %s1092_s11 }
 0x414   :  { %v353_v17 = vpop.permute.xlu0 %352 }
 0x415   :  { %355 = vxpose.xlu0.c.b16.start.end [1/1] (short) (narrow) %v353_v17, 16  ;;  %v490_v30 = vsel %vm177_vm3, %v353_v17, 0 }
 0x418   :  { %v418_v19 = vpop.permute.xlu0 %417 }
 0x419   :  { %420 = vxpose.xlu1.c.b16.start.end [1/1] (short) (narrow) %v418_v19, 16  ;;  %v539_v32 = vsel %vm177_vm3, %v418_v19, 0 }
 0x41c   :  { %v342_v23 = vpop.permute.xlu0 %341 }
 0x41d   :  { %v347_v24 = vsel %vm129_vm2, %v333_v22, %v342_v23  ;;  %689 = vrot.lane.b32.xlu1 %v330_v13, %s1091_s3 }
 0x41e   :  { %v374_v4 = vsel %vm177_vm3, %v347_v24, 0 }
 0x41f   :  { %885 = vmatpush3.bf16.msra.mxu1 %v374_v4 }
 0x420   :  { %v344_v26 = vpop.permute.xlu0 %343  ;;  %896 = vmatprep.subr.bf16.mxu1 %v1089_v0 }
 0x421   :  { %v350_v27 = vsel %vm129_vm2, %v334_v25, %v344_v26 }
 0x422   :  { %v439_v28 = vsel %vm177_vm3, %v350_v27, 0 }
 0x423   :  { %891 = vmatpush3.bf16.msra.mxu0 %v439_v28 }
 0x424   :  { %902 = vmatprep.subr.bf16.mxu0 %v1089_v0 }
 0x47b   :  { %v363_v29 = vpop.trf.xlu0 }
 0x47c   :  { %887 = vmatmul.mubr.msk.bf16.vlgmr.msra.gmra.mrb[4].mxu1 %vm129_vm2, %v363_v29 }
 0x47d   :  { %897 = vmatpush3.bf16.msra.mxu1 %v490_v30  ;;  %898 = vmatprep.mubr.msk.bf16.mxu1 %vm1090_vm0, %v1089_v0 }
 0x47f   :  { %v428_v31 = vpop.trf.xlu1 }
 0x480   :  { %893 = vmatmul.mubr.msk.bf16.vlgmr.msra.gmra.mrb[8].mxu0 %vm129_vm2, %v428_v31 }
 0x481   :  { %903 = vmatpush3.bf16.msra.mxu0 %v539_v32  ;;  %904 = vmatprep.mubr.msk.bf16.mxu0 %vm1090_vm0, %v1089_v0 }
 0x48f   :  { %v690_v54 = vpop.permute.xlu1 %689 }
 0x490   :  { %v708_v58 = vcombine.high %v690_v54, %v1089_v0  ;;  %v715_v61 = vrot.slane %v690_v54, %v1254_v42 }
 0x492   :  { %v722_v1 = vrot.slane %v708_v58, %v1254_v42 }
 0x54f   :  { %v410_v38 = vpop.f32.mrb[4].mxu1 }
 0x550   :  { %v481_v39 = vpack.c.bf16 %v410_v38, %v410_v38  ;;  %v888_v40 = vpop.f32.mrb[5].mxu1  ;;  %v589_v45 = vrot.slane %v410_v38, %v1254_v42 }
 0x551   :  { %v413_v41 = vpop.f32.mrb[6].mxu1 }
 0x552   :  { %484 = vrot.lane.b32.xlu0 %v481_v39, %s1091_s3  ;;  %v889_v43 = vpop.f32.mrb[7].mxu1 }
 0x553   :  { %v475_v44 = vpop.f32.mrb[8].mxu0 }
 0x554   :  { %v482_v46 = vpack.c.bf16 %v475_v44, %v475_v44  ;;  %v596_v47 = vrot.slane %v475_v44, %v1254_v42  ;;  %v894_v48 = vpop.f32.mrb[9].mxu0 }
 0x555   :  { %v478_v49 = vpop.f32.mrb[10].mxu0 }
 0x556   :  { %v597_v50 = vcombine.low %v589_v45, %v596_v47  ;;  %v598_v51 = vcombine.high %v589_v45, %v596_v47  ;;  %533 = vrot.lane.b32.xlu0 %v482_v46, %s1091_s3  ;;  %v895_v52 = vpop.f32.mrb[11].mxu0 }
 0x558   :  { %v1272_v13 = vrot.slane %v597_v50, %v604_v2  ;;  %v612_v19 = vrot.slane %v598_v51, %v604_v2 }
 0x55a   :  { %687 = vrot.lane.b32.xlu0 %v1227_v10, %s1091_s3  ;;  %v613_v16 = vcombine.high %v1272_v13, %v1089_v0  ;;  %v614_v37 = vcombine.high %v612_v19, %v1089_v0 }
 0x5c4   :  { %v485_v53 = vpop.permute.xlu0 %484 }
 0x5c5   :  { %899 = vmatmul.mubr.msk.bf16.vlgmr.msra.gmra.mrb[8].mxu1 %vm129_vm2, %v485_v53 }
 0x5c8   :  { %v534_v57 = vpop.permute.xlu0 %533 }
 0x5c9   :  { %905 = vmatmul.mubr.msk.bf16.vlgmr.msra.gmra.mrb[12].mxu0 %vm129_vm2, %v534_v57 }
 0x5cc   :  { %v688_v60 = vpop.permute.xlu0 %687 }
 0x5cd   :  { %v693_v62 = vcombine.high %v688_v60, %v1089_v0  ;;  %v700_v63 = vrot.slane %v688_v60, %v1254_v42 }
 0x5cf   :  { %v707_v5 = vrot.slane %v693_v62, %v1254_v42  ;;  %v723_v6 = vcombine.low %v700_v63, %v715_v61  ;;  %v724_v7 = vcombine.high %v700_v63, %v715_v61 }
 0x5d1   :  { %v739_v8 = vcombine.low %v707_v5, %v722_v1  ;;  %v738_v9 = vrot.slane %v724_v7, %v604_v2  ;;  %v731_v10 = vrot.slane %v723_v6, %v604_v2  ;;  %v740_v17 = vcombine.high %v707_v5, %v722_v1 }
 0x5d3   :  { %764 = vrot.lane.b32.xlu1 %v738_v9, %s1092_s11  ;;  %v755_v11 = vcombine.high %v731_v10, %v1089_v0  ;;  %v747_v12 = vrot.slane %v739_v8, %v604_v2  ;;  %v756_v15 = vcombine.high %v738_v9, %v1089_v0  ;;  %v754_v18 = vrot.slane %v740_v17, %v604_v2 }
 0x5d5   :  { %760 = vrot.lane.b32.xlu0 %v755_v11, %s1087_s10  ;;  %v757_v14 = vcombine.high %v747_v12, %v1089_v0  ;;  %v758_v35 = vcombine.high %v754_v18, %v1089_v0 }
 0x5d7   :  { %776 = vrot.lane.b32.xlu1 %v757_v14, %s1095_s12 }
 0x5d9   :  { %768 = vrot.lane.b32.xlu0 %v756_v15, %s1096_s13 }
 0x5db   :  { %616 = vrot.lane.b32.xlu1 %v613_v16, %s1092_s11 }
 0x5dd   :  { %772 = vrot.lane.b32.xlu0 %v747_v12, %s1097_s14 }
 0x5e1   :  { %780 = vrot.lane.b32.xlu0 %v754_v18, %s1098_s15 }
 0x5e5   :  { %620 = vrot.lane.b32.xlu0 %v612_v19, %s1097_s14 }
 0x645   :  { %v765_v41 = vpop.permute.xlu1 %764 }
 0x647   :  { %v761_v38 = vpop.permute.xlu0 %760 }
 0x648   :  { %v787_v44 = vsel %vm320_vm5, %v731_v10, %v761_v38 }
 0x649   :  { %v777_v43 = vpop.permute.xlu1 %776  ;;  %v788_v46 = vsel %vm129_vm2, %v787_v44, %v765_v41 }
 0x64b   :  { %v769_v39 = vpop.permute.xlu0 %768 }
 0x64c   :  { %v789_v48 = vsel %vm681_vm10, %v788_v46, %v769_v39 }
 0x64d   :  { %v617_v47 = vpop.permute.xlu1 %616 }
 0x64e   :  { %v627_v59 = vsel %vm129_vm2, %v1272_v13, %v617_v47 }
 0x64f   :  { %v773_v40 = vpop.permute.xlu0 %772 }
 0x650   :  { %v790_v49 = vsel %vm82_vm1, %v789_v48, %v773_v40 }
 0x651   :  { %v792_v51 = vsel %vm791_vm11, %v790_v49, %v777_v43 }
 0x698   :  { %v526_v20 = vpop.f32.mrb[8].mxu1 }
 0x699   :  { %vm581_vm8 = vcmp.gt.f32.partialorder %v526_v20, 0.1  ;;  %v900_v21 = vpop.f32.mrb[9].mxu1 }
 0x69a   :  { %v529_v22 = vpop.f32.mrb[10].mxu1  ;;  %v633_v3 = vsel %vm581_vm8, %v526_v20, 0.0 }
 0x69b   :  { %v901_v23 = vpop.f32.mrb[11].mxu1  ;;  %v640_v27 = vrot.slane %v633_v3, %v1254_v42 }
 0x69c   :  { %v575_v24 = vpop.f32.mrb[12].mxu0 }
 0x69d   :  { %vm582_vm9 = vcmp.gt.f32.partialorder %v575_v24, 0.1  ;;  %v906_v4 = vpop.f32.mrb[13].mxu0 }
 0x69e   :  { %v641_v25 = vsel %vm582_vm9, %v575_v24, 0.0  ;;  %v578_v26 = vpop.f32.mrb[14].mxu0 }
 0x69f   :  { %v648_v28 = vrot.slane %v641_v25, %v1254_v42  ;;  %v907_v29 = vpop.f32.mrb[15].mxu0  ;;  %v781_v42 = vpop.permute.xlu0 %780 }
 0x6a0   :  { %v793_v53 = vsel %vm629_vm12, %v792_v51, %v781_v42 }
 0x6a1   :  { %v649_v30 = vcombine.low %v640_v27, %v648_v28  ;;  %v650_v31 = vcombine.high %v640_v27, %v648_v28 }
 0x6a3   :  { %v664_v32 = vrot.slane %v650_v31, %v604_v2  ;;  %v657_v33 = vrot.slane %v649_v30, %v604_v2  ;;  %v621_v45 = vpop.permute.xlu0 %620 }
 0x6a5   :  { %672 = vrot.lane.b32.xlu0 %v664_v32, %s1092_s11  ;;  %v665_v34 = vcombine.high %v657_v33, %v1089_v0  ;;  %v666_v36 = vcombine.high %v664_v32, %v1089_v0 }
 0x6a7   :  { %668 = vrot.lane.b32.xlu1 %v665_v34, %s1087_s10  ;;  %s1100_s10 = smov [#allocation9]  }
 0x6a8   :  { %s813_s17 = sshll.u32 %s1100_s10, 4  ;;  %s814_s17 = int_to_ptr.vmem [resolvable:$true] %s813_s17 }
 0x6a9   :  { %784 = vrot.lane.b32.xlu0 %v758_v35, %s1099_s16  ;;  %s1010_s21 = scalar_lea.vmem %s814_s17, 32  ;;  %p1015_p11 = scmp.lt.s32.totalorder %s814_s17, %s814_s17 }
 0x6aa   :  { %p1011_p10 = scmp.ne.s32.totalorder %s814_s17, %s1010_s21  ;;  %p1016_p12 = scmp.lt.s32.totalorder %s1010_s21, %s1010_s21 }
 0x6ab   :  { %676 = vrot.lane.b32.xlu1 %v666_v36, %s1096_s13 }
 0x6ac   :  { %p1017_p13 = por %p1016_p12, %p1015_p11 }
 0x6ae   :  { %p1018_p0 = pnand %p1017_p13, %p1011_p10 }
 0x6af   :  { %624 = vrot.lane.b32.xlu1 %v614_v37, %s1098_s15 }
 0x717   :  { %v673_v0 = vpop.permute.xlu0 %672 }
 0x719   :  { %v669_v50 = vpop.permute.xlu1 %668 }
 0x71a   :  { %v679_v52 = vsel %vm320_vm5, %v657_v33, %v669_v50 }
 0x71b   :  { %v785_v54 = vpop.permute.xlu0 %784  ;;  %v680_v56 = vsel %vm129_vm2, %v679_v52, %v673_v0 }
 0x71c   :  { %v795_v55 = vsel %vm794_vm13, %v793_v53, %v785_v54 }
 0x71d   :  { %v677_v57 = vpop.permute.xlu1 %676  ;;  %796 = vst.msk [vmem:[#allocation11] sm:$0x3] %vm631_vm14, %v795_v55 }
 0x71e   :  { %v682_v58 = vsel %vm681_vm10, %v680_v56, %v677_v57 }
 0x71f   :  { %684 = vst.msk [vmem:[#allocation9] sm:$0x3] %vm683_vm15, %v682_v58 }
 0x720   :  { %1021 = shalt.err (!%p1018_p0)
}
 0x721   :  { %s1022_s25 = scalar_lea.hbm %s1361_s5, 32 }
 0x722   :  { %p1023_p1 = scmp.ne.s32.totalorder %s1361_s5, %s1022_s25  ;;  %p1026_p2 = scmp.lt.u32.totalorder %s1022_s25, %s1361_s5 }
 0x724   :  { %p1028_p3 = pnand %p1026_p2, %p1023_p1 }
 0x726   :  { %1031 = shalt.err (!%p1028_p3)
}
 0x727   :  { %816 = dma.vmem_to_hbm [thread:$0]  %s814_s17, 32, %s1361_s5, [#allocation10]   ;;  %v628_v60 = vsel %vm82_vm1, %v627_v59, %v621_v45  ;;  %v625_v61 = vpop.permute.xlu1 %624 }
 0x728   :  { %s1032_s8 = scalar_lea.vmem %s1301_s19, 32  ;;  %p1037_p5 = scmp.lt.s32.totalorder %s1301_s19, %s1301_s19 }
 0x729   :  { %p1033_p4 = scmp.ne.s32.totalorder %s1301_s19, %s1032_s8  ;;  %p1038_p6 = scmp.lt.s32.totalorder %s1032_s8, %s1032_s8 }
 0x72b   :  { %p1039_p7 = por %p1038_p6, %p1037_p5 }
 0x72d   :  { %p1040_p8 = pnand %p1039_p7, %p1033_p4 }
 0x72f   :  { %1043 = shalt.err (!%p1040_p8)
}
 0x730   :  { %s1044_s2 = scalar_lea.hbm %s1362_s6, 32 }
 0x731   :  { %p1045_p9 = scmp.ne.s32.totalorder %s1362_s6, %s1044_s2  ;;  %p1048_p10 = scmp.lt.u32.totalorder %s1044_s2, %s1362_s6 }
 0x733   :  { %p1050_p11 = pnand %p1048_p10, %p1045_p9 }
 0x735   :  { %1053 = shalt.err (!%p1050_p11)
}
 0x736   :  { %826 = dma.vmem_to_hbm [thread:$0]  %s1301_s19, 32, %s1362_s6, [#allocation10]   ;;  %v630_v62 = vsel %vm629_vm12, %v628_v60, %v625_v61 }
 0x737   :  { %632 = vst.msk [vmem:[#allocation8] sm:$0x3] %vm631_vm14, %v630_v62  ;;  %s1054_s14 = scalar_lea.vmem %s1303_s1, 32  ;;  %p1059_p13 = scmp.lt.s32.totalorder %s1303_s1, %s1303_s1 }
 0x738   :  { %p1055_p12 = scmp.ne.s32.totalorder %s1303_s1, %s1054_s14  ;;  %p1060_p0 = scmp.lt.s32.totalorder %s1054_s14, %s1054_s14 }
 0x73a   :  { %p1061_p1 = por %p1060_p0, %p1059_p13 }
 0x73c   :  { %p1062_p2 = pnand %p1061_p1, %p1055_p12 }
 0x73e   :  { %1065 = shalt.err (!%p1062_p2)
}
 0x73f   :  { %s1066_s10 = scalar_lea.hbm %s1360_s4, 32 }
 0x740   :  { %p1067_p3 = scmp.ne.s32.totalorder %s1360_s4, %s1066_s10  ;;  %p1070_p4 = scmp.lt.u32.totalorder %s1066_s10, %s1360_s4 }
 0x742   :  { %p1072_p5 = pnand %p1070_p4, %p1067_p3 }
 0x744   :  { %1075 = shalt.err (!%p1072_p5)
}
 0x745   :  { %806 = dma.vmem_to_hbm [thread:$0]  %s1303_s1, 32, %s1360_s4, [#allocation4]  }
 0x746   :  { %1080 = dma.done.wait [#allocation4], 32  }
 0x747   :  { %1081 = vsyncadd [#allocation4], 4294967264 }
 0x748   :  { %1082 = dma.done.wait [#allocation10], 64  }
 0x749   :  { %1083 = vsyncadd [#allocation10], 4294967232 }
 0x74a   :  { %836 = vsyncpa [#allocation3], 1 }
 0x74b   :  { %837 = vsyncpa [#allocation6], 1 }
 0x74c   :  { %838 = vsyncpa [#allocation4], 1 }
 0x74d   :  { %839 = vsyncpa [#allocation10], 1 }

</bundles_post_ra>
